<compile_context>
chip_gen: v7x
topology: tpu7x:2x2x1
jax: 0.10.0
libtpu: 0.0.40
codegen_flags: <defaults>
</compile_context>

<pallas_src>
import functools

import jax
import jax.numpy as jnp
from jax.experimental import pallas as pl
from jax.experimental.pallas import tpu as pltpu


# ---------------- Pass 1: pooled channel sums (squeeze) ----------------
def _pool_sum_kernel(x_ref, sum_ref, *, hw_total, t_hw, tiles_per_split):
    # x_ref:   (1, C, t_hw)     one HW tile of one batch, HW on the lane axis.
    # sum_ref: (1, 1, 1, C) f32 accumulator, resident across the reduction axis.
    s = pl.program_id(0)          # reduction-split index (v7x dual-TC sharding)
    t = pl.program_id(2)          # HW-tile index within this split (reduction axis)

    @pl.when(t == 0)
    def _():
        sum_ref[...] = jnp.zeros_like(sum_ref)

    # Mask out lanes past the true HW extent (covers the partial last tile and
    # any fully-out-of-range duplicate tile produced by the clamped index_map).
    hw_off = (s * tiles_per_split + t) * t_hw
    lane = jax.lax.broadcasted_iota(jnp.int32, x_ref.shape, x_ref.ndim - 1)
    xv = jnp.where(lane + hw_off < hw_total,
                   x_ref[...].astype(jnp.float32), 0.0)

    sum_ref[...] += jnp.sum(xv, axis=-1)[:, None, None, :]


# ---------------- Pass 2: streaming elementwise scale ----------------
def _scale_kernel(x_ref, g_ref, o_ref):
    # x_ref/o_ref: (1, C, t_hw)   g_ref: (1, C, 1)  -> per-channel lane broadcast.
    o_ref[...] = x_ref[...] * g_ref[...]


# ---------------- tile / VMEM sizing ----------------
def _vmem_limit_bytes():
    cap = 64 * 1024 * 1024            # conservative default: v7x per-core VMEM
    try:
        cap = int(pltpu.get_tpu_info().vmem_capacity_bytes)
    except Exception:
        pass
    # Leave headroom for Mosaic internal scratch; cap well under physical VMEM.
    return min(cap * 3 // 4, 100 * 1024 * 1024)


def _pick_hw_tile(hw, c, itemsize, budget):
    """Largest lane tile (multiple of 128, or the full HW extent) whose
    (C, t_hw) block stays within `budget` bytes."""
    bytes_per_lane = max(1, c * itemsize)
    max_lanes = max(128, (budget // bytes_per_lane) // 128 * 128)
    return hw if hw <= max_lanes else max_lanes


# ---------------- wrapper ----------------
def se_layer(x_nchw, w1, w2):
    """SELayer forward.
    x_nchw: (B, C, H, W); w1: (C, Hid); w2: (Hid, C) — the two bias-free
    Linear weights stored pre-transposed as (in, out)."""
    B, C, H, W = x_nchw.shape
    HW = H * W

    # Free view: NCHW -> (B, C, HW).  HW sits on the lane axis, so the big
    # streaming loads/stores are lane-dense for any C and no transpose passes
    # over HBM are needed.
    x = x_nchw.reshape(B, C, HW)
    itemsize = x.dtype.itemsize

    vmem_limit = _vmem_limit_bytes()
    # Pass 2 double-buffers both input and output blocks (4 big buffers).
    t_hw2 = _pick_hw_tile(HW, C, itemsize, budget=min(vmem_limit // 6, 16 << 20))
    # Pass 1 only double-buffers the input block -> ~2x larger tile.
    t_hw1 = _pick_hw_tile(HW, C, itemsize, budget=min(vmem_limit // 3, 16 << 20))

    # --- Pass 1: per-(batch, channel) spatial sum, reduction axis last ---
    n_hw1 = pl.cdiv(HW, t_hw1)
    # With B == 1 only one "parallel" slice exists; split the reduction in two
    # so both v7x TensorCores get work (harmless on single-TC chips).
    n_split = 2 if (B == 1 and n_hw1 >= 2) else 1
    tiles_per_split = pl.cdiv(n_hw1, n_split)

    def x1_map(s, b, t):
        idx = s * tiles_per_split + t
        # Clamp out-of-range duplicate tiles; their contribution is fully
        # masked to zero inside the kernel.
        return (b, 0, jnp.minimum(idx, n_hw1 - 1))

    kernel1 = functools.partial(_pool_sum_kernel, hw_total=HW, t_hw=t_hw1,
                                tiles_per_split=tiles_per_split)
    part_sums = pl.pallas_call(
        kernel1,
        out_shape=jax.ShapeDtypeStruct((n_split, B, 1, C), jnp.float32),
        grid=(n_split, B, tiles_per_split),
        in_specs=[pl.BlockSpec((1, C, t_hw1), x1_map)],
        out_specs=pl.BlockSpec((1, 1, 1, C), lambda s, b, t: (s, b, 0, 0)),
        compiler_params=pltpu.CompilerParams(
            dimension_semantics=("parallel", "parallel", "arbitrary"),
            vmem_limit_bytes=vmem_limit),
    )(x)

    # --- Excitation on the tiny pooled (B, C) tensor: plain JAX (f32) ---
    # TODO(synk): could be folded into the last pass-1 step; FLOPs are negligible.
    y = part_sums.sum(axis=0).reshape(B, C) / jnp.float32(HW)
    h = jnp.maximum(jnp.dot(y, w1, preferred_element_type=jnp.float32), 0.0)
    g = jax.nn.sigmoid(jnp.dot(h, w2, preferred_element_type=jnp.float32))
    gates = g.astype(x.dtype).reshape(B, C, 1)        # cast once, in the wrapper

    # --- Pass 2: stream x * gate (memory-bound, fully pipelined) ---
    n_hw2 = pl.cdiv(HW, t_hw2)
    out = pl.pallas_call(
        _scale_kernel,
        out_shape=jax.ShapeDtypeStruct((B, C, HW), x.dtype),
        grid=(B, n_hw2),
        in_specs=[
            pl.BlockSpec((1, C, t_hw2), lambda b, t: (b, 0, t)),
            pl.BlockSpec((1, C, 1), lambda b, t: (b, 0, 0)),
        ],
        out_specs=pl.BlockSpec((1, C, t_hw2), lambda b, t: (b, 0, t)),
        compiler_params=pltpu.CompilerParams(
            dimension_semantics=("parallel", "parallel"),
            vmem_limit_bytes=vmem_limit),
    )(x, gates)

    return out.reshape(B, C, H, W)


def se_layer_ref(x_nchw, w1, w2):
    """Pure-JAX reference matching the PyTorch forward."""
    y = jnp.mean(x_nchw, axis=(2, 3))                 # (B, C)
    h = jnp.maximum(y @ w1, 0.0)                      # (B, Hid)
    s = jax.nn.sigmoid(h @ w2)                        # (B, C)
    return x_nchw * s[:, :, None, None]


if __name__ == "__main__":
    B, C, H, W = 2, 4, 16, 16
    HIDDEN = 8

    key = jax.random.PRNGKey(0)
    kx, k1, k2 = jax.random.split(key, 3)

    x = jax.random.normal(kx, (B, C, H, W), dtype=jnp.float32)
    # PyTorch nn.Linear(in, out) weight is (out, in); stored here as (in, out)
    # so the excitation does y @ W directly.
    w1 = jax.random.normal(k1, (C, HIDDEN), dtype=jnp.float32) * 0.1   # Linear(C -> HIDDEN)
    w2 = jax.random.normal(k2, (HIDDEN, C), dtype=jnp.float32) * 0.1   # Linear(HIDDEN -> C)

    out = se_layer(x, w1, w2)
    out = jax.block_until_ready(out)

    ref = se_layer_ref(x, w1, w2)
    assert out.shape == (B, C, H, W)
    assert jnp.allclose(out, ref, atol=1e-5, rtol=1e-5), "mismatch vs reference"

    print("KERNEL_OK")
</pallas_src>

<mosaic_0001>
module attributes {stable_mosaic.version = 11 : i64} {
  func.func @_pool_sum_kernel(%arg0: i32, %arg1: i32, %arg2: i32, %arg3: memref<1x4x256xf32, #tpu.memory_space<vmem>>, %arg4: memref<1x1x1x4xf32, #tpu.memory_space<vmem>>) attributes {dimension_semantics = [#tpu.dimension_semantics<parallel>, #tpu.dimension_semantics<parallel>, #tpu.dimension_semantics<arbitrary>], iteration_bounds = array<i64: 1, 2, 1>, scalar_prefetch = 0 : i64, scratch_operands = 0 : i64, tpu.core_type = #tpu.core_type<tc>, window_params = [{transform_indices = @transform_0, window_bounds = array<i64: 1, 4, 256>}, {transform_indices = @transform_1, window_bounds = array<i64: 1, 1, 1, 4>}]} {
    %c0_i32 = arith.constant 0 : i32
    %0 = arith.cmpi eq, %arg2, %c0_i32 : i32
    %1 = arith.extui %0 : i1 to i32
    %c0_i32_0 = arith.constant 0 : i32
    %2 = arith.cmpi ne, %1, %c0_i32_0 : i32
    scf.if %2 {
      %cst_13 = arith.constant 0.000000e+00 : f32
      %19 = vector.broadcast %cst_13 : f32 to vector<1x1x1x4xf32>
      %c0_14 = arith.constant 0 : index
      %c0_15 = arith.constant 0 : index
      %c0_16 = arith.constant 0 : index
      %c0_17 = arith.constant 0 : index
      %20 = vector.load %arg4[%c0_14, %c0_15, %c0_16, %c0_17] : memref<1x1x1x4xf32, #tpu.memory_space<vmem>>, vector<1x1x1x4xf32>
      tpu.vector_store %arg4[%c0_14, %c0_15, %c0_16, %c0_17], %19 {strides = array<i32>} : memref<1x1x1x4xf32, #tpu.memory_space<vmem>>, vector<1x1x1x4xf32>,
    } else {
    }
    %c1_i32 = arith.constant 1 : i32
    %3 = arith.muli %arg0, %c1_i32 : i32
    %4 = arith.addi %3, %arg2 : i32
    %c256_i32 = arith.constant 256 : i32
    %5 = arith.muli %4, %c256_i32 : i32
    %6 = tpu.iota {dimensions = array<i32: 2>} : vector<1x4x256xi32>
    %7 = vector.broadcast %5 : i32 to vector<1x4x256xi32>
    %8 = arith.addi %6, %7 : vector<1x4x256xi32>
    %c256_i32_1 = arith.constant 256 : i32
    %9 = vector.broadcast %c256_i32_1 : i32 to vector<1x4x256xi32>
    %10 = arith.cmpi slt, %8, %9 : vector<1x4x256xi32>
    %c0 = arith.constant 0 : index
    %c0_2 = arith.constant 0 : index
    %c0_3 = arith.constant 0 : index
    %11 = vector.load %arg3[%c0, %c0_2, %c0_3] : memref<1x4x256xf32, #tpu.memory_space<vmem>>, vector<1x4x256xf32>
    %cst = arith.constant 0.000000e+00 : f32
    %12 = vector.broadcast %cst : f32 to vector<1x4x256xf32>
    %13 = arith.select %10, %11, %12 : vector<1x4x256xi1>, vector<1x4x256xf32>
    %c0_4 = arith.constant 0 : index
    %c0_5 = arith.constant 0 : index
    %c0_6 = arith.constant 0 : index
    %c0_7 = arith.constant 0 : index
    %14 = vector.load %arg4[%c0_4, %c0_5, %c0_6, %c0_7] : memref<1x1x1x4xf32, #tpu.memory_space<vmem>>, vector<1x1x1x4xf32>
    %cst_8 = arith.constant dense<0.000000e+00> : vector<1x4xf32>
    %15 = vector.multi_reduction <add>, %13, %cst_8 [2] : vector<1x4x256xf32> to vector<1x4xf32>
    %16 = vector.shape_cast %15 : vector<1x4xf32> to vector<1x1x1x4xf32>
    %17 = arith.addf %14, %16 : vector<1x1x1x4xf32>
    %c0_9 = arith.constant 0 : index
    %c0_10 = arith.constant 0 : index
    %c0_11 = arith.constant 0 : index
    %c0_12 = arith.constant 0 : index
    %18 = vector.load %arg4[%c0_9, %c0_10, %c0_11, %c0_12] : memref<1x1x1x4xf32, #tpu.memory_space<vmem>>, vector<1x1x1x4xf32>
    tpu.vector_store %arg4[%c0_9, %c0_10, %c0_11, %c0_12], %17 {strides = array<i32>} : memref<1x1x1x4xf32, #tpu.memory_space<vmem>>, vector<1x1x1x4xf32>,
    return
  }
  func.func @transform_0(%arg0: i32, %arg1: i32, %arg2: i32) -> (i32, i32, i32) {
    %c1_i32 = arith.constant 1 : i32
    %0 = arith.muli %arg0, %c1_i32 : i32
    %1 = arith.addi %0, %arg2 : i32
    %c0_i32 = arith.constant 0 : i32
    %2 = arith.minsi %1, %c0_i32 : i32
    %c0_i32_0 = arith.constant 0 : i32
    %c0_i32_1 = arith.constant 0 : i32
    return %arg1, %c0_i32_0, %2 : i32, i32, i32
  }
  func.func @transform_1(%arg0: i32, %arg1: i32, %arg2: i32) -> (i32, i32, i32, i32) {
    %c0_i32 = arith.constant 0 : i32
    %c0_i32_0 = arith.constant 0 : i32
    %c0_i32_1 = arith.constant 0 : i32
    return %arg0, %arg1, %c0_i32, %c0_i32_0 : i32, i32, i32, i32
  }
}

</mosaic_0001>

<bundles_post_ra>
// kernel: tpu_custom_call.1
= control target key start
LH: loop header
LB: loop body
LE: loop exit
PB: predicated region body
PF: predicated region fallthrough
CT: control target
= control target key end

     0   :  { %6 = vsyncpa [#allocation3], 0  ;;  %s752_s0 = inlined_call_operand.hbm [shape: f32[2,4,256], index: 0, kind: input, shape index: {}]   ;;  %s753_s1 = inlined_call_operand.hbm [shape: f32[1,2,1,4], index: 1, kind: output, shape index: {}]  }
   0x1   :  { %8 = vsyncpa [#allocation3 + $0x1], 0 }
   0x2   :  { %9 = vsyncpa [#allocation4], 0 }
   0x3   :  { %11 = vsyncpa [#allocation4 + $0x1], 0  ;;  %s571_s6 = smov 0   ;;  %s573_s7 = smov 0  }
   0x4   :  { %s575_s8 = smov 0   ;;  %s577_s9 = smov 0  }
   0x5   :  { %s579_s10 = smov 0   ;;  %s581_s11 = smov 0  }
   0x6 LB: > { %s362_s12 = sadd.s32 4294967295, %s554_s11   ;;  %s363_s13 = sadd.s32 4294967294, %s554_s11   ;;  %s554_s11 = sphi %s581_s11, %s17_s11   ;;  %s550_s10 = sphi %s579_s10, %s769_s10   ;;  %s546_s9 = sphi %s577_s9, %s768_s9   ;;  %s542_s8 = sphi %s575_s8, %s767_s8   ;;  %s538_s7 = sphi %s573_s7, %s766_s7   ;;  %s534_s6 = sphi %s571_s6, %s765_s6  }
   0x7   : > { %s32_s14 = sadd.s32 1, %s550_s10  ;;  %s51_s15 = sadd.s32 1, %s542_s8 }
   0x8   : > { %p34_p0 = scmp.ge.s32.totalorder %s32_s14, 2  ;;  %p58_p1 = scmp.ne.s32.totalorder %s542_s8, %s538_s7 }
   0x9   : > { %p59_p2 = scmp.eq.s32.totalorder %s554_s11, 0  ;;  %p64_p3 = scmp.ne.s32.totalorder %s538_s7, %s534_s6 }
   0xa   : > { %s771_s14 = smov (%p34_p0, %s32_s14), 0  ;;  %p65_p5 = scmp.eq.s32.totalorder %s362_s12, 0 }
   0xb   : > { %p612_p4 = por %p59_p2, %p58_p1  ;;  %s46_s17 = ssub.s32 %s550_s10, %s771_s14 }
   0xc   : > { %p90_p6 = scmp.eq.s32.totalorder %s362_s12, 1  ;;  %p49_p7 = scmp.eq.s32.totalorder %s46_s17, 0 }
   0xd   : > { %p618_p8 = por %p65_p5, %p64_p3  ;;  %p96_p10 = scmp.eq.s32.totalorder %s363_s13, 1 }
   0xe   : > { %p622_p9 = por %p90_p6, %p58_p1  ;;  %p387_p13 = scmp.lt.s32.totalorder %s554_s11, 2 }
   0xf   : > { %s627_s20 = scalar_select %p49_p7, %s542_s8, %s51_s15  }
  0x10   : > { %s757_s19 = scalar_select %p622_p9, 1, 0 }
  0x11   : > { %p629_p11 = por %p96_p10, %p64_p3  ;;  %s116_s22 = sand.u32 1, %s542_s8  }
  0x12   : > { %s366_s23 = sshll.u32 %s116_s22, 3  ;;  %s374_s24 = sshll.u32 %s550_s10, 7 }
  0x13   : > { %s758_s21 = scalar_select %p629_p11, 1, 0 }
  0x14   : > { %s640_s27 = scalar_lea.hbm %s752_s0, %s374_s24  ;;  %s120_s28 = scalar_lea.vmem [#allocation2], %s366_s23 }
  0x15   : > { %s133_s29 = sshll.u32 %s120_s28, 4  ;;  %p646_p0 = pnand %p387_p13, %p612_p4  ;;  %s642_s29 = int_to_ptr.vmem [resolvable:$true] %s133_s29 }
  0x16   : > { %s117_s2 = scalar_lea.sflag [#allocation3], %s116_s22  ;;  %s442_s3 = scalar_lea.hbm %s640_s27, 128 }
  0x17   : > { %p443_p3 = scmp.ne.s32.totalorder %s640_s27, %s442_s3  ;;  %p444_p5 = pneg %p646_p0 }
  0x18   : > { %s447_s12 = scalar_lea.hbm %s752_s0, 256  ;;  %p448_p4 = scmp.lt.u32.totalorder %s640_s27, %s752_s0 }
  0x19   : > { %p445_p6 = pnand %p444_p5, %p443_p3  ;;  %p449_p10 = scmp.lt.u32.totalorder %s447_s12, %s442_s3 }
  0x1a   : > { %p451_p12 = scmp.lt.u32.totalorder %s442_s3, %s640_s27 }
  0x1b   : > { %p446_p7 = pneg %p445_p6  ;;  %p450_p13 = por %p449_p10, %p448_p4 }
  0x1d   : > { %p452_p1 = por %p451_p12, %p450_p13 }
  0x1f   : > { %p453_p2 = pnand %p452_p1, %p446_p7 }
  0x21   : > { %456 = shalt.err (!%p453_p2)
}
  0x22   : > { %s457_s16 = scalar_lea.vmem %s642_s29, 128  ;;  %s556_s17 = smov [#allocation2]  }
  0x23   : > { %p458_p3 = scmp.ne.s32.totalorder %s642_s29, %s457_s16  ;;  %s462_s22 = sshll.u32 %s556_s17, 4  ;;  %s463_s22 = int_to_ptr.vmem [resolvable:$false] %s462_s22 }
  0x24   : > { %s464_s23 = scalar_lea.vmem %s463_s22, 256  ;;  %p465_p9 = scmp.lt.s32.totalorder %s642_s29, %s463_s22 }
  0x25   : > { %p460_p6 = pnand %p458_p3, %p444_p5  ;;  %p466_p4 = scmp.lt.s32.totalorder %s464_s23, %s457_s16 }
  0x27   : > { %p461_p11 = pneg %p460_p6  ;;  %p467_p10 = por %p466_p4, %p465_p9 }
  0x29   : > { %p468_p12 = pnand %p467_p10, %p461_p11 }
  0x2b   : > { %471 = shalt.err (!%p468_p12)
}
  0x2c   : > { %382 = dma.hbm_to_vmem [thread:$0]  (!%p646_p0), %s640_s27, 128, %s642_s29, %s117_s2  }
  0x2d   : > { %p760_p1 = scmp.lt.s32.totalorder %s554_s11, 3  ;;  %p761_p2 = scmp.ge.s32.totalorder %s554_s11, 1 }
  0x2f   : > { %p139_p5 = pnand %p761_p2, %p760_p1 }
  0x30   : > { %s682_s24 = sand.u32 (!%p139_p5), 1, %s538_s7  }
  0x31   : > { %142 = sbr.rel (%p139_p5) target bundleno = 365 (0x16d), region = 24  ;;  %s370_s25 = sshll.u32 (!%p139_p5), %s682_s24, 3 }
  0x32   : > { %s145_s26 = scalar_lea.sflag (!%p139_p5), [#allocation3], %s682_s24  ;;  %s148_s28 = scalar_lea.vmem (!%p139_p5), [#allocation2], %s370_s25 }
  0x38   : > { %525 = dma.done.wait (%p618_p8), %s145_s26, 128  }
  0x39   : > { %527 = vsyncadd (%p618_p8), %s145_s26, 4294967168  ;;  %vm174_vm0 = vcmask 24576   ;;  %s691_s27 = scalar_lea.vmem [#allocation5], %s682_s24  ;;  %v557_v0 = vmov 0.0   ;;  %vm193_vm1 = vcmask 1043456   ;;  %v186_v1 = vld [vmem:[%s148_s28] sm:$0xff]  ;;  %v178_v7 = vlaneseq }
  0x3a   : > { %175 = vst.msk [vmem:[%s691_s27] sm:$0x1] %vm174_vm0, %v557_v0  ;;  %v188_v2 = vcombine.high %v186_v1, %v186_v1  ;;  %v194_v3 = vsel %vm193_vm1, %v186_v1, 0.0  ;;  %v558_v6 = vmov 0   ;;  %v559_v11 = vmov 1966171168  }
  0x3b   : > { %440 = vset.pattern.permute.xlu0 %v558_v6  ;;  %v201_v8 = vshrl.u32 %v178_v7, 7  ;;  %v179_v9 = vand.u32 127, %v178_v7  ;;  %v219_v12 = vunpack.c.l.s4 %v559_v11  ;;  %s371_s18 = sshll.u32 %s546_s9, 4  ;;  %s280_s29 = sshll.u32 %s691_s27, 4  ;;  %s703_s29 = int_to_ptr.vmem [resolvable:$true] %s280_s29 }
  0x3c   : > { %v195_v4 = vsel %vm193_vm1, %v188_v2, 0.0  ;;  %s701_s3 = scalar_lea.hbm %s753_s1, %s371_s18  ;;  %s266_s4 = scalar_lea.sflag [#allocation4], %s682_s24 }
  0x3d   : > { %v196_v5 = vadd.f32 %v195_v4, %v194_v3  ;;  %v245_v10 = vsub.s32 %v179_v9, %v201_v8  ;;  %v220_v13 = vunpack.c.0.s8 %v219_v12  ;;  %v202_v14 = vsub.s32 0, %v201_v8  ;;  %s472_s5 = scalar_lea.vmem %s703_s29, 16  ;;  %p762_p9 = scmp.ne.s32.totalorder %s757_s19, 0 }
  0x3e   : > { %v206_v15 = vsub.s32 1, %v201_v8  ;;  %v210_v16 = vsub.s32 2, %v201_v8  ;;  %v214_v17 = vsub.s32 3, %v201_v8  ;;  %p473_p8 = scmp.ne.s32.totalorder %s703_s29, %s472_s5  ;;  %s560_s9 = smov [#allocation5]  }
  0x3f   : > { %197 = vadd.xlane.f32.xlu0 %v196_v5  ;;  %v223_v19 = vsub.s32 %v220_v13, %v201_v8  ;;  %s476_s12 = sshll.u32 %s560_s9, 4  ;;  %s477_s12 = int_to_ptr.vmem [resolvable:$false] %s476_s12 }
  0x40   : > { %p474_p11 = pnand %p473_p8, %p762_p9  ;;  %s478_s13 = scalar_lea.vmem %s477_s12, 32 }
  0x41   : > { %v192_v33 = vld [vmem:[%s691_s27] sm:$0x1]  ;;  %p479_p7 = scmp.lt.s32.totalorder %s703_s29, %s477_s12  ;;  %p480_p13 = scmp.lt.s32.totalorder %s478_s13, %s472_s5 }
  0x42   : > { %p475_p0 = pneg %p474_p11 }
  0x43   : > { %p481_p3 = por %p480_p13, %p479_p7 }
  0x45   : > { %p482_p6 = pnand %p481_p3, %p475_p0 }
  0xcc   : > { %v198_v18 = vpop.xlane.xlu0 %197 }
  0xcd   : > { %v203_v20 = vrot.slane %v198_v18, %v202_v14  ;;  %v207_v21 = vrot.slane %v198_v18, %v206_v15  ;;  %v211_v22 = vrot.slane %v198_v18, %v210_v16  ;;  %v215_v23 = vrot.slane %v198_v18, %v214_v17 }
  0xcf   : > { %v216_v24 = vcombine.low %v203_v20, %v207_v21  ;;  %v217_v25 = vcombine.low %v211_v22, %v215_v23 }
  0xd1   : > { %v224_v26 = vrot.slane %v216_v24, %v223_v19  ;;  %v231_v27 = vrot.slane %v217_v25, %v223_v19 }
  0xd3   : > { %v232_v28 = vcombine.low %v224_v26, %v231_v27 }
  0xd5   : > { %v239_v29 = vrot.slane %v232_v28, %v223_v19 }
  0xd7   : > { %241 = vperm.xlu0 %440, %v239_v29  }
 0x156   : > { %v242_v30 = vpop.permute.xlu0 %241 }
 0x157   : > { %v246_v31 = vrot.slane %v242_v30, %v245_v10 }
 0x159   : > { %v253_v32 = vrot.slane %v246_v31, %v223_v19 }
 0x15b   : > { %v260_v34 = vrot.slane %v253_v32, %v223_v19 }
 0x15d   : > { %v262_v35 = vadd.f32 %v260_v34, %v192_v33 }
 0x15f   : > { %264 = vst.msk [vmem:[%s691_s27] sm:$0x1] %vm174_vm0, %v262_v35 }
 0x160   : > { %485 = shalt.err (!%p482_p6)
}
 0x161   : > { %s486_s15 = scalar_lea.hbm %s701_s3, 16  ;;  %s490_s22 = scalar_lea.hbm %s753_s1, 32 }
 0x162   : > { %p487_p4 = scmp.ne.s32.totalorder %s701_s3, %s486_s15  ;;  %p491_p1 = scmp.lt.u32.totalorder %s701_s3, %s753_s1 }
 0x163   : > { %p492_p2 = scmp.lt.u32.totalorder %s490_s22, %s486_s15  ;;  %p494_p8 = scmp.lt.u32.totalorder %s486_s15, %s701_s3 }
 0x164   : > { %p488_p10 = pnand %p487_p4, %p762_p9 }
 0x165   : > { %p493_p5 = por %p492_p2, %p491_p1 }
 0x166   : > { %p489_p12 = pneg %p488_p10 }
 0x167   : > { %p495_p11 = por %p494_p8, %p493_p5 }
 0x169   : > { %p496_p0 = pnand %p495_p11, %p489_p12 }
 0x16b   : > { %499 = shalt.err (!%p496_p0)
}
 0x16c   : > { %377 = dma.vmem_to_hbm [thread:$0]  (%p762_p9), %s703_s29, 16, %s701_s3, %s266_s4  }
 0x16d PF: > { %s292_s25 = sand.u32 1, %s534_s6   ;;  %p763_p7 = scmp.ne.s32.totalorder %s758_s21, 0 }
 0x16e   : > { %p764_p13 = scmp.ge.s32.totalorder %s554_s11, 2  ;;  %s293_s26 = scalar_lea.sflag [#allocation4], %s292_s25 }
 0x170   : > { %p384_p3 = pnand %p764_p13, %p763_p7 }
 0x172   : > { %529 = dma.done.wait (!%p384_p3), %s293_s26, 16  }
 0x173   : > { %531 = vsyncadd (!%p384_p3), %s293_s26, 4294967280  ;;  %s17_s11 = sadd.s32 1, %s554_s11   ;;  %s765_s6 = smov %s538_s7 }
 0x174   : > { %p14_p6 = scmp.ge.s32.totalorder %s17_s11, 4   ;;  %s766_s7 = smov %s542_s8 }
 0x175   : > { %s767_s8 = smov %s627_s20  ;;  %s768_s9 = smov %s550_s10 }
 0x176   : > { %s769_s10 = smov %s771_s14  ;;  %16 = sbr.rel (!%p14_p6) target bundleno = 6 (0x6), region = 73 }
 0x17d   :  { %297 = vsyncpa [#allocation3], 1 }
 0x17e   :  { %299 = vsyncpa [#allocation3 + $0x1], 1 }
 0x17f   :  { %300 = vsyncpa [#allocation4], 1 }
 0x180   :  { %302 = vsyncpa [#allocation4 + $0x1], 1 }

</bundles_post_ra>
